<compile_context>
chip_gen: v5e
topology: v5e:2x2
jax: 0.10.0
libtpu: 0.0.40
codegen_flags: <defaults>
</compile_context>

<pallas_src>
import math
from functools import partial

import jax
import jax.numpy as jnp
from jax.experimental import pallas as pl
from jax.experimental.pallas import tpu as pltpu

_SQRT2 = math.sqrt(2.0)
_LANES = 128
_TILE_R = 1024  # rows per grid block -> 512 KiB f32 per block (fits every chip)


def _sqrt2_erfinv_f32(x, use_tail):
    """sqrt(2) * erfinv(x), Giles (2010) f32 polynomial with sqrt(2) folded in.

    `use_tail` is a static Python bool: when the truncation threshold is small
    enough (<= ~2.6) the |x| range guarantees w < 5 and the tail branch is dead
    code, so it is not emitted at all.
    """
    w = -jnp.log((1.0 - x) * (1.0 + x))

    # Central branch (w < 5).
    w1 = w - 2.5
    p = jnp.float32(2.81022636e-08 * _SQRT2)
    p = jnp.float32(3.43273939e-07 * _SQRT2) + p * w1
    p = jnp.float32(-3.5233877e-06 * _SQRT2) + p * w1
    p = jnp.float32(-4.39150654e-06 * _SQRT2) + p * w1
    p = jnp.float32(0.00021858087 * _SQRT2) + p * w1
    p = jnp.float32(-0.00125372503 * _SQRT2) + p * w1
    p = jnp.float32(-0.00417768164 * _SQRT2) + p * w1
    p = jnp.float32(0.246640727 * _SQRT2) + p * w1
    p = jnp.float32(1.50140941 * _SQRT2) + p * w1

    if use_tail:
        # Tail branch (w >= 5) — only emitted for large thresholds.
        w2 = jnp.sqrt(w) - 3.0
        q = jnp.float32(-0.000200214257 * _SQRT2)
        q = jnp.float32(0.000100950558 * _SQRT2) + q * w2
        q = jnp.float32(0.00134934322 * _SQRT2) + q * w2
        q = jnp.float32(-0.00367342844 * _SQRT2) + q * w2
        q = jnp.float32(0.00573950773 * _SQRT2) + q * w2
        q = jnp.float32(-0.0076224613 * _SQRT2) + q * w2
        q = jnp.float32(0.00943887047 * _SQRT2) + q * w2
        q = jnp.float32(1.00167406 * _SQRT2) + q * w2
        q = jnp.float32(2.83297682 * _SQRT2) + q * w2
        p = jnp.where(w < 5.0, p, q)

    return p * x


def _truncnorm_kernel(u_ref, o_ref, *, a, b, threshold, use_tail):
    """Map uniforms in [0,1) to truncated-normal samples on [-threshold, threshold]."""
    u = u_ref[...]
    # Fused affine map: x = 2*(cdf_lo + u*(cdf_hi-cdf_lo)) - 1 = a + u*b.
    x = jnp.float32(a) + u * jnp.float32(b)
    y = _sqrt2_erfinv_f32(x, use_tail)
    t = jnp.float32(threshold)
    o_ref[...] = jnp.clip(y, -t, t)


def truncated_norm(key, size, threshold=2.0):
    """Pallas equivalent of TruncatedNorm.forward(size, threshold)."""
    if isinstance(size, int):
        size = (size,)
    size = tuple(int(s) for s in size)
    total = 1
    for s in size:
        total *= s

    # Row count for a lane-dense (rows, 128) slab, padded to the (8,128) tile.
    rows = pl.cdiv(total, _LANES)
    rows = max(((rows + 7) // 8) * 8, 8)
    if rows > _TILE_R:
        tile_r = _TILE_R
        rows = ((rows + _TILE_R - 1) // _TILE_R) * _TILE_R
    else:
        tile_r = rows
    grid = rows // tile_r

    # Compile-time truncation constants (threshold is static).
    erf_t = math.erf(threshold / _SQRT2)
    a = -erf_t            # 2*cdf_lo - 1
    b = 2.0 * erf_t       # 2*(cdf_hi - cdf_lo)
    use_tail = threshold > 2.6  # tail branch of erfinv only needed for large t

    u = jax.random.uniform(key, (rows, _LANES), dtype=jnp.float32)

    flat = pl.pallas_call(
        partial(_truncnorm_kernel, a=a, b=b, threshold=float(threshold),
                use_tail=use_tail),
        out_shape=jax.ShapeDtypeStruct((rows, _LANES), jnp.float32),
        grid=(grid,),
        in_specs=[pl.BlockSpec((tile_r, _LANES), lambda i: (i, 0))],
        out_specs=pl.BlockSpec((tile_r, _LANES), lambda i: (i, 0)),
        compiler_params=pltpu.CompilerParams(
            dimension_semantics=("parallel",)),
    )(u)

    if rows * _LANES == total:
        return flat.reshape(size)       # exact fit: free reshape, no slice copy
    return flat.reshape(-1)[:total].reshape(size)


if __name__ == "__main__":
    key = jax.random.PRNGKey(0)

    size = (2, 4, 16, 16)
    threshold = 2.0

    out = truncated_norm(key, size, threshold=threshold)
    out = jax.block_until_ready(out)

    assert out.shape == size, out.shape
    assert out.dtype == jnp.float32, out.dtype
    assert bool(jnp.all(out >= -threshold)) and bool(jnp.all(out <= threshold))
    # Sanity: truncated-normal samples should have near-zero mean and
    # std close to the truncated-normal std (~0.88 for threshold=2).
    assert abs(float(jnp.mean(out))) < 0.2
    assert 0.6 < float(jnp.std(out)) < 1.1

    print("KERNEL_OK")
</pallas_src>

<mosaic_0001>
module attributes {stable_mosaic.version = 11 : i64} {
  func.func @_truncnorm_kernel(%arg0: i32, %arg1: memref<16x128xf32, #tpu.memory_space<vmem>>, %arg2: memref<16x128xf32, #tpu.memory_space<vmem>>) attributes {dimension_semantics = [#tpu.dimension_semantics<parallel>], iteration_bounds = array<i64: 1>, scalar_prefetch = 0 : i64, scratch_operands = 0 : i64, tpu.core_type = #tpu.core_type<tc>, window_params = [{transform_indices = @transform_0, window_bounds = array<i64: 16, 128>}, {transform_indices = @transform_1, window_bounds = array<i64: 16, 128>}]} {
    %c0 = arith.constant 0 : index
    %c0_0 = arith.constant 0 : index
    %0 = vector.load %arg1[%c0, %c0_0] : memref<16x128xf32, #tpu.memory_space<vmem>>, vector<16x128xf32>
    %cst = arith.constant 1.90899944 : f32
    %1 = vector.broadcast %cst : f32 to vector<16x128xf32>
    %2 = arith.mulf %0, %1 : vector<16x128xf32>
    %cst_1 = arith.constant -0.954499721 : f32
    %3 = vector.broadcast %cst_1 : f32 to vector<16x128xf32>
    %4 = arith.addf %3, %2 : vector<16x128xf32>
    %cst_2 = arith.constant 1.000000e+00 : f32
    %5 = vector.broadcast %cst_2 : f32 to vector<16x128xf32>
    %6 = arith.subf %5, %4 : vector<16x128xf32>
    %cst_3 = arith.constant 1.000000e+00 : f32
    %7 = vector.broadcast %cst_3 : f32 to vector<16x128xf32>
    %8 = arith.addf %7, %4 : vector<16x128xf32>
    %9 = arith.mulf %6, %8 : vector<16x128xf32>
    %10 = math.log %9 : vector<16x128xf32>
    %cst_4 = arith.constant 0.000000e+00 : f32
    %11 = vector.broadcast %cst_4 : f32 to vector<16x128xf32>
    %12 = arith.subf %11, %10 : vector<16x128xf32>
    %cst_5 = arith.constant 2.500000e+00 : f32
    %13 = vector.broadcast %cst_5 : f32 to vector<16x128xf32>
    %14 = arith.subf %12, %13 : vector<16x128xf32>
    %cst_6 = arith.constant 3.97426021E-8 : f32
    %15 = vector.broadcast %cst_6 : f32 to vector<16x128xf32>
    %16 = arith.mulf %15, %14 : vector<16x128xf32>
    %cst_7 = arith.constant 4.85462635E-7 : f32
    %17 = vector.broadcast %cst_7 : f32 to vector<16x128xf32>
    %18 = arith.addf %17, %16 : vector<16x128xf32>
    %19 = arith.mulf %18, %14 : vector<16x128xf32>
    %cst_8 = arith.constant -4.9828227E-6 : f32
    %20 = vector.broadcast %cst_8 : f32 to vector<16x128xf32>
    %21 = arith.addf %20, %19 : vector<16x128xf32>
    %22 = arith.mulf %21, %14 : vector<16x128xf32>
    %cst_9 = arith.constant -6.21052823E-6 : f32
    %23 = vector.broadcast %cst_9 : f32 to vector<16x128xf32>
    %24 = arith.addf %23, %22 : vector<16x128xf32>
    %25 = arith.mulf %24, %14 : vector<16x128xf32>
    %cst_10 = arith.constant 3.0912002E-4 : f32
    %26 = vector.broadcast %cst_10 : f32 to vector<16x128xf32>
    %27 = arith.addf %26, %25 : vector<16x128xf32>
    %28 = arith.mulf %27, %14 : vector<16x128xf32>
    %cst_11 = arith.constant -0.00177303492 : f32
    %29 = vector.broadcast %cst_11 : f32 to vector<16x128xf32>
    %30 = arith.addf %29, %28 : vector<16x128xf32>
    %31 = arith.mulf %30, %14 : vector<16x128xf32>
    %cst_12 = arith.constant -0.00590813393 : f32
    %32 = vector.broadcast %cst_12 : f32 to vector<16x128xf32>
    %33 = arith.addf %32, %31 : vector<16x128xf32>
    %34 = arith.mulf %33, %14 : vector<16x128xf32>
    %cst_13 = arith.constant 0.348802656 : f32
    %35 = vector.broadcast %cst_13 : f32 to vector<16x128xf32>
    %36 = arith.addf %35, %34 : vector<16x128xf32>
    %37 = arith.mulf %36, %14 : vector<16x128xf32>
    %cst_14 = arith.constant 2.12331367 : f32
    %38 = vector.broadcast %cst_14 : f32 to vector<16x128xf32>
    %39 = arith.addf %38, %37 : vector<16x128xf32>
    %40 = arith.mulf %39, %4 : vector<16x128xf32>
    %cst_15 = arith.constant 0.000000e+00 : f32
    %cst_16 = arith.constant 2.000000e+00 : f32
    %41 = arith.subf %cst_15, %cst_16 : f32
    %cst_17 = arith.constant 2.000000e+00 : f32
    %42 = vector.broadcast %41 : f32 to vector<16x128xf32>
    %43 = arith.maximumf %42, %40 : vector<16x128xf32>
    %44 = vector.broadcast %cst_17 : f32 to vector<16x128xf32>
    %45 = arith.minimumf %44, %43 : vector<16x128xf32>
    %c0_18 = arith.constant 0 : index
    %c0_19 = arith.constant 0 : index
    %46 = vector.load %arg2[%c0_18, %c0_19] : memref<16x128xf32, #tpu.memory_space<vmem>>, vector<16x128xf32>
    tpu.vector_store %arg2[%c0_18, %c0_19], %45 {strides = array<i32>} : memref<16x128xf32, #tpu.memory_space<vmem>>, vector<16x128xf32>,
    return
  }
  func.func @transform_0(%arg0: i32) -> (i32, i32) {
    %c0_i32 = arith.constant 0 : i32
    %c0_i32_0 = arith.constant 0 : i32
    return %arg0, %c0_i32 : i32, i32
  }
  func.func @transform_1(%arg0: i32) -> (i32, i32) {
    %c0_i32 = arith.constant 0 : i32
    %c0_i32_0 = arith.constant 0 : i32
    return %arg0, %c0_i32 : i32, i32
  }
}

</mosaic_0001>

<bundles_post_ra>
// kernel: tpu_custom_call.1
= control target key start
LH: loop header
LB: loop body
LE: loop exit
PB: predicated region body
PF: predicated region fallthrough
CT: control target
= control target key end

     0   :  { %6 = vsyncpa [#allocation3], 0  ;;  %s194_s0 = inlined_call_operand.hbm [shape: f32[16,128], index: 0, kind: input, shape index: {}]   ;;  %s195_s1 = inlined_call_operand.hbm [shape: f32[16,128], index: 1, kind: output, shape index: {}]  }
   0x1   :  { %7 = vsyncpa [#allocation4], 0  ;;  %s12_s8 = sshll.u32 %s194_s0, 4  ;;  %s168_s9 = smov [#allocation2]   ;;  %s13_s8 = int_to_ptr.hbm [resolvable:$true] %s12_s8 }
   0x2   :  { %s14_s10 = sshll.u32 %s168_s9, 4  ;;  %s169_s11 = smov 128   ;;  %s15_s10 = int_to_ptr.vmem [resolvable:$true] %s14_s10 }
   0x3   :  { %s170_s12 = smov 8  }
   0x4   :  { %20 = dma.hbm_to_vmem [thread:$0]  %s13_s8, 256, %s15_s10, [#allocation3], %s169_s11, %s169_s11, %s170_s12  }
   0x5   :  { %164 = dma.done.wait [#allocation3], 256  }
   0x6   :  { %165 = vsyncadd [#allocation3], 4294967040  ;;  %v25_v0 = vld [vmem:[#allocation2] sm:$0xff]  ;;  %v26_v1 = vld [vmem:[#allocation2 + $0x8] sm:$0xff]  ;;  %s171_s0 = smov [#allocation5]   ;;  %s91_s16 = sshll.u32 %s195_s1, 4  ;;  %s92_s16 = int_to_ptr.hbm [resolvable:$true] %s91_s16 }
   0x7   :  { %v27_v2 = vmul.f32 1.9089994, %v25_v0  ;;  %v28_v3 = vmul.f32 1.9089994, %v26_v1  ;;  %s89_s13 = sshll.u32 %s171_s0, 4  ;;  %s90_s13 = int_to_ptr.vmem [resolvable:$true] %s89_s13 }
   0x9   :  { %v29_v4 = vadd.f32 -0.9544997, %v27_v2  ;;  %v30_v5 = vadd.f32 -0.9544997, %v28_v3 }
   0xb   :  { %v31_v6 = vsub.f32 1.0, %v29_v4  ;;  %v33_v7 = vadd.f32 1.0, %v29_v4  ;;  %v32_v8 = vsub.f32 1.0, %v30_v5  ;;  %v34_v9 = vadd.f32 1.0, %v30_v5 }
   0xd   :  { %v35_v10 = vmul.f32 %v33_v7, %v31_v6  ;;  %v36_v11 = vmul.f32 %v34_v9, %v32_v8 }
   0xf   :  { %112 = vlog2.f32 %v35_v10 }
  0x10   :  { %114 = vlog2.f32 %v36_v11 }
  0x15   :  { %v113_v12 = vpop.eup %112 }
  0x16   :  { %v115_v13 = vpop.eup %114  ;;  %v38_v14 = vmul.f32 0.6931472, %v113_v12 }
  0x17   :  { %v40_v15 = vmul.f32 0.6931472, %v115_v13 }
  0x18   :  { %v41_v16 = vsub.f32 0.0, %v38_v14 }
  0x19   :  { %v42_v17 = vsub.f32 0.0, %v40_v15 }
  0x1a   :  { %v104_v18 = vadd.f32 -2.5, %v41_v16 }
  0x1b   :  { %v105_v19 = vadd.f32 -2.5, %v42_v17 }
  0x1c   :  { %v45_v20 = vmul.f32 3.9742602e-08, %v104_v18 }
  0x1d   :  { %v46_v21 = vmul.f32 3.9742602e-08, %v105_v19 }
  0x1e   :  { %v47_v22 = vadd.f32 4.8546264e-07, %v45_v20 }
  0x1f   :  { %v48_v23 = vadd.f32 4.8546264e-07, %v46_v21 }
  0x20   :  { %v49_v24 = vmul.f32 %v104_v18, %v47_v22 }
  0x21   :  { %v50_v25 = vmul.f32 %v105_v19, %v48_v23 }
  0x22   :  { %v51_v26 = vadd.f32 -4.9828227e-06, %v49_v24 }
  0x23   :  { %v52_v27 = vadd.f32 -4.9828227e-06, %v50_v25 }
  0x24   :  { %v53_v28 = vmul.f32 %v104_v18, %v51_v26 }
  0x25   :  { %v54_v29 = vmul.f32 %v105_v19, %v52_v27 }
  0x26   :  { %v55_v30 = vadd.f32 -6.210528e-06, %v53_v28 }
  0x27   :  { %v56_v31 = vadd.f32 -6.210528e-06, %v54_v29 }
  0x28   :  { %v57_v32 = vmul.f32 %v104_v18, %v55_v30 }
  0x29   :  { %v58_v33 = vmul.f32 %v105_v19, %v56_v31 }
  0x2a   :  { %v59_v34 = vadd.f32 0.00030912002, %v57_v32 }
  0x2b   :  { %v60_v35 = vadd.f32 0.00030912002, %v58_v33 }
  0x2c   :  { %v61_v36 = vmul.f32 %v104_v18, %v59_v34 }
  0x2d   :  { %v62_v37 = vmul.f32 %v105_v19, %v60_v35 }
  0x2e   :  { %v63_v38 = vadd.f32 -0.0017730349, %v61_v36 }
  0x2f   :  { %v64_v39 = vadd.f32 -0.0017730349, %v62_v37 }
  0x30   :  { %v65_v40 = vmul.f32 %v104_v18, %v63_v38 }
  0x31   :  { %v66_v41 = vmul.f32 %v105_v19, %v64_v39 }
  0x32   :  { %v67_v42 = vadd.f32 -0.005908134, %v65_v40 }
  0x33   :  { %v68_v43 = vadd.f32 -0.005908134, %v66_v41 }
  0x34   :  { %v69_v44 = vmul.f32 %v104_v18, %v67_v42 }
  0x35   :  { %v70_v45 = vmul.f32 %v105_v19, %v68_v43 }
  0x36   :  { %v71_v46 = vadd.f32 0.34880266, %v69_v44 }
  0x37   :  { %v72_v47 = vadd.f32 0.34880266, %v70_v45 }
  0x38   :  { %v73_v48 = vmul.f32 %v104_v18, %v71_v46 }
  0x39   :  { %v74_v49 = vmul.f32 %v105_v19, %v72_v47 }
  0x3a   :  { %v75_v50 = vadd.f32 2.1233137, %v73_v48 }
  0x3b   :  { %v76_v51 = vadd.f32 2.1233137, %v74_v49 }
  0x3c   :  { %v77_v52 = vmul.f32 %v75_v50, %v29_v4 }
  0x3d   :  { %v78_v53 = vmul.f32 %v76_v51, %v30_v5 }
  0x3e   :  { %v106_v54 = vclamps-f32 %v77_v52, 2.0 }
  0x3f   :  { %v107_v55 = vclamps-f32 %v78_v53, 2.0 }
  0x40   :  { %83 = vst [vmem:[#allocation5] sm:$0xff] %v106_v54 }
  0x41   :  { %84 = vst [vmem:[#allocation5 + $0x8] sm:$0xff] %v107_v55 }
  0x42   :  { %97 = dma.vmem_to_hbm [thread:$0]  %s90_s13, 256, %s92_s16, [#allocation4], %s169_s11, %s169_s11, %s170_s12  }
  0x43   :  { %166 = dma.done.wait [#allocation4], 256  }
  0x44   :  { %167 = vsyncadd [#allocation4], 4294967040 }
  0x45   :  { %102 = vsyncpa [#allocation3], 1 }
  0x46   :  { %103 = vsyncpa [#allocation4], 1 }

</bundles_post_ra>
